<compile_context>
chip_gen: v6e
topology: v6e:2x2x1
jax: 0.10.0
libtpu: 0.0.40
codegen_flags: <defaults>
</compile_context>

<pallas_src>
import jax
import jax.numpy as jnp
from jax.experimental import pallas as pl
from jax.experimental.pallas import tpu as pltpu

_TILE_M_MAX = 2048  # packed rows per grid step (multiple of 8), fits 32 MiB scoped VMEM


def _expert_kernel(x_ref, wfc_ref, bfc_ref, wml_ref, bml_ref, eps_ref,
                   mu_ref, lgr_ref, z_ref):
    # x1 = relu(fc(x))  -- block-diagonal packed weights keep K/N lane-dense.
    x1 = jnp.dot(x_ref[...], wfc_ref[...], preferred_element_type=jnp.float32)
    x1 = jnp.maximum(x1 + bfc_ref[...], 0.0)

    # Fused [mu | lgr] = x1 @ [W_mu | W_lgr] + [b_mu | b_lgr]
    ml = jnp.dot(x1, wml_ref[...], preferred_element_type=jnp.float32) + bml_ref[...]
    n = mu_ref.shape[-1]
    mu = ml[:, :n]
    lgr = ml[:, n:]

    mu_ref[...] = mu.astype(mu_ref.dtype)
    lgr_ref[...] = lgr.astype(lgr_ref.dtype)
    # Normal(loc=mu, scale=exp(lgr)).rsample() == mu + exp(lgr) * eps
    z_ref[...] = (mu + jnp.exp(lgr) * eps_ref[...]).astype(z_ref.dtype)


def _round_up(a, b):
    return (a + b - 1) // b * b


def _block_diag(w, p):
    """(in_c, out_c) -> (p*in_c, p*out_c) block-diagonal replication."""
    if p == 1:
        return w
    return jnp.kron(jnp.eye(p, dtype=w.dtype), w)


def conv3d_expert_l(x, params, eps):
    """x: (..., in_channels). Returns (mu, lgr, z_sample), each (..., out_channels)."""
    w_fc, b_fc, w_mu, b_mu, w_lg, b_lg = params
    in_c, out_c = w_fc.shape

    lead = x.shape[:-1]
    m = 1
    for d in lead:
        m *= d

    # Lane-packing factor: fold P logical rows into one 128-lane-dense row.
    p = 128 // out_c if (out_c <= 128 and 128 % out_c == 0) else 1

    x2d = x.reshape(m, in_c)
    eps2d = eps.reshape(m, out_c)

    m_pack = pl.cdiv(m, p)          # packed row count
    m_rows = m_pack * p             # logical rows after row padding
    if m_rows != m:
        x2d = jnp.pad(x2d, ((0, m_rows - m), (0, 0)))
        eps2d = jnp.pad(eps2d, ((0, m_rows - m), (0, 0)))

    xp = x2d.reshape(m_pack, p * in_c)
    epsp = eps2d.reshape(m_pack, p * out_c)

    tile_m = min(_TILE_M_MAX, _round_up(m_pack, 8))
    m_grid = _round_up(m_pack, tile_m)
    if m_grid != m_pack:
        xp = jnp.pad(xp, ((0, m_grid - m_pack), (0, 0)))
        epsp = jnp.pad(epsp, ((0, m_grid - m_pack), (0, 0)))

    # Pack weights: block-diagonal (lane-dense K/N) and fuse mu/lgr along the N axis.
    w_fc_bd = _block_diag(w_fc, p)                                   # (p*in_c, p*out_c)
    b_fc_p = jnp.tile(b_fc.reshape(1, out_c), (1, p))                # (1, p*out_c)
    w_ml_bd = jnp.concatenate(
        [_block_diag(w_mu, p), _block_diag(w_lg, p)], axis=1)        # (p*out_c, 2*p*out_c)
    b_ml_p = jnp.concatenate(
        [jnp.tile(b_mu.reshape(1, out_c), (1, p)),
         jnp.tile(b_lg.reshape(1, out_c), (1, p))], axis=1)          # (1, 2*p*out_c)

    n_pack = p * out_c
    grid = (m_grid // tile_m,)

    def row_spec(width):
        return pl.BlockSpec((tile_m, width), lambda i: (i, 0))

    def const_spec(shape):
        return pl.BlockSpec(shape, lambda i: (0, 0))

    flops = 2 * m * in_c * out_c + 4 * m * out_c * out_c + 3 * m * out_c
    bytes_accessed = 4 * (m * in_c + 4 * m * out_c
                          + in_c * out_c + 2 * out_c * out_c + 3 * out_c)

    mu_p, lgr_p, z_p = pl.pallas_call(
        _expert_kernel,
        out_shape=(
            jax.ShapeDtypeStruct((m_grid, n_pack), jnp.float32),
            jax.ShapeDtypeStruct((m_grid, n_pack), jnp.float32),
            jax.ShapeDtypeStruct((m_grid, n_pack), jnp.float32),
        ),
        grid_spec=pltpu.PrefetchScalarGridSpec(
            num_scalar_prefetch=0,
            grid=grid,
            in_specs=[
                row_spec(p * in_c),                 # x (lane-packed)
                const_spec((p * in_c, n_pack)),     # W_fc block-diag (VMEM-resident)
                const_spec((1, n_pack)),            # b_fc tiled
                const_spec((n_pack, 2 * n_pack)),   # [W_mu | W_lgr] block-diag fused
                const_spec((1, 2 * n_pack)),        # [b_mu | b_lgr] tiled
                row_spec(n_pack),                   # eps (lane-packed)
            ],
            out_specs=[
                row_spec(n_pack),                   # mu
                row_spec(n_pack),                   # lgr
                row_spec(n_pack),                   # z sample
            ],
        ),
        compiler_params=pltpu.CompilerParams(
            dimension_semantics=("parallel",),      # shard M tiles across TCs (v7x)
            vmem_limit_bytes=32 * 1024 * 1024,
        ),
        cost_estimate=pl.CostEstimate(
            flops=flops,
            transcendentals=m * out_c,
            bytes_accessed=bytes_accessed,
        ),
    )(xp, w_fc_bd, b_fc_p, w_ml_bd, b_ml_p, epsp)

    def unpack(a):
        a = a[:m_pack].reshape(m_rows, out_c)[:m]
        return a.reshape(*lead, out_c)

    return unpack(mu_p), unpack(lgr_p), unpack(z_p)


def init_params(key, in_channels, out_channels):
    """Deterministic init matching nn.Linear shapes (weights stored transposed: (in, out))."""
    k1, k2, k3, k4, k5, k6 = jax.random.split(key, 6)
    lim_fc = 1.0 / jnp.sqrt(in_channels)
    lim_o = 1.0 / jnp.sqrt(out_channels)
    w_fc = jax.random.uniform(k1, (in_channels, out_channels), jnp.float32, -lim_fc, lim_fc)
    b_fc = jax.random.uniform(k2, (1, out_channels), jnp.float32, -lim_fc, lim_fc)
    w_mu = jax.random.uniform(k3, (out_channels, out_channels), jnp.float32, -lim_o, lim_o)
    b_mu = jax.random.uniform(k4, (1, out_channels), jnp.float32, -lim_o, lim_o)
    w_lg = jax.random.uniform(k5, (out_channels, out_channels), jnp.float32, -lim_o, lim_o)
    b_lg = jax.random.uniform(k6, (1, out_channels), jnp.float32, -lim_o, lim_o)
    return (w_fc, b_fc, w_mu, b_mu, w_lg, b_lg)


if __name__ == "__main__":
    in_channels = 32
    out_channels = 32
    batch, seq = 2, 8

    key = jax.random.PRNGKey(0)
    kx, kp, ke = jax.random.split(key, 3)

    x = jax.random.normal(kx, (batch, seq, in_channels), jnp.float32)
    params = init_params(kp, in_channels, out_channels)
    # Standard-normal noise for the reparameterized sample (rsample), generated in
    # the wrapper so the kernel stays deterministic given the key.
    # TODO(synk): optionally generate eps in-kernel with pltpu.prng_random_bits to
    # cut HBM traffic further (needs a uniform->normal transform).
    eps = jax.random.normal(ke, (batch, seq, out_channels), jnp.float32)

    mu, lgr, z = conv3d_expert_l(x, params, eps)
    jax.block_until_ready((mu, lgr, z))

    # Pure-JAX reference check.
    w_fc, b_fc, w_mu, b_mu, w_lg, b_lg = params
    x1_ref = jnp.maximum(x @ w_fc + b_fc[0], 0.0)
    mu_ref = x1_ref @ w_mu + b_mu[0]
    lgr_ref = x1_ref @ w_lg + b_lg[0]
    z_ref = mu_ref + jnp.exp(lgr_ref) * eps
    assert jnp.allclose(mu, mu_ref, atol=2e-5), "mu mismatch"
    assert jnp.allclose(lgr, lgr_ref, atol=2e-5), "lgr mismatch"
    assert jnp.allclose(z, z_ref, atol=2e-5), "sample mismatch"

    print("KERNEL_OK")
</pallas_src>

<mosaic_0001>
module attributes {stable_mosaic.version = 11 : i64} {
  func.func @_expert_kernel(%arg0: i32, %arg1: memref<8x128xf32, #tpu.memory_space<vmem>>, %arg2: memref<128x128xf32, #tpu.memory_space<vmem>>, %arg3: memref<1x128xf32, #tpu.memory_space<vmem>>, %arg4: memref<128x256xf32, #tpu.memory_space<vmem>>, %arg5: memref<1x256xf32, #tpu.memory_space<vmem>>, %arg6: memref<8x128xf32, #tpu.memory_space<vmem>>, %arg7: memref<8x128xf32, #tpu.memory_space<vmem>>, %arg8: memref<8x128xf32, #tpu.memory_space<vmem>>, %arg9: memref<8x128xf32, #tpu.memory_space<vmem>>) attributes {dimension_semantics = [#tpu.dimension_semantics<parallel>], iteration_bounds = array<i64: 1>, scalar_prefetch = 0 : i64, scratch_operands = 0 : i64, tpu.core_type = #tpu.core_type<tc>, window_params = [{transform_indices = @transform_0, window_bounds = array<i64: 8, 128>}, {pipeline_mode = #tpu.pipeline_mode<synchronous>, transform_indices = @transform_1, window_bounds = array<i64: 128, 128>}, {pipeline_mode = #tpu.pipeline_mode<synchronous>, transform_indices = @transform_2, window_bounds = array<i64: 1, 128>}, {pipeline_mode = #tpu.pipeline_mode<synchronous>, transform_indices = @transform_3, window_bounds = array<i64: 128, 256>}, {pipeline_mode = #tpu.pipeline_mode<synchronous>, transform_indices = @transform_4, window_bounds = array<i64: 1, 256>}, {transform_indices = @transform_5, window_bounds = array<i64: 8, 128>}, {transform_indices = @transform_6, window_bounds = array<i64: 8, 128>}, {transform_indices = @transform_7, window_bounds = array<i64: 8, 128>}, {transform_indices = @transform_8, window_bounds = array<i64: 8, 128>}]} {
    %c0 = arith.constant 0 : index
    %c0_0 = arith.constant 0 : index
    %0 = vector.load %arg1[%c0, %c0_0] : memref<8x128xf32, #tpu.memory_space<vmem>>, vector<8x128xf32>
    %c0_1 = arith.constant 0 : index
    %c0_2 = arith.constant 0 : index
    %1 = vector.load %arg2[%c0_1, %c0_2] : memref<128x128xf32, #tpu.memory_space<vmem>>, vector<128x128xf32>
    %cst = arith.constant dense<0.000000e+00> : vector<8x128xf32>
    %2 = tpu.matmul %0, %1, %cst {dimension_numbers = #tpu.dot_dimension_numbers<[1], [0], [0], [1], [0, 0, 1, 1], [], []>} : vector<8x128xf32>, vector<128x128xf32>, vector<8x128xf32> -> vector<8x128xf32>
    %c0_3 = arith.constant 0 : index
    %c0_4 = arith.constant 0 : index
    %3 = vector.load %arg3[%c0_3, %c0_4] : memref<1x128xf32, #tpu.memory_space<vmem>>, vector<1x128xf32>
    %4 = vector.broadcast %3 : vector<1x128xf32> to vector<8x128xf32>
    %5 = arith.addf %2, %4 : vector<8x128xf32>
    %cst_5 = arith.constant 0.000000e+00 : f32
    %6 = vector.broadcast %cst_5 : f32 to vector<8x128xf32>
    %7 = arith.maximumf %5, %6 : vector<8x128xf32>
    %c0_6 = arith.constant 0 : index
    %c0_7 = arith.constant 0 : index
    %8 = vector.load %arg4[%c0_6, %c0_7] : memref<128x256xf32, #tpu.memory_space<vmem>>, vector<128x256xf32>
    %cst_8 = arith.constant dense<0.000000e+00> : vector<8x256xf32>
    %9 = tpu.matmul %7, %8, %cst_8 {dimension_numbers = #tpu.dot_dimension_numbers<[1], [0], [0], [1], [0, 0, 1, 1], [], []>} : vector<8x128xf32>, vector<128x256xf32>, vector<8x256xf32> -> vector<8x256xf32>
    %c0_9 = arith.constant 0 : index
    %c0_10 = arith.constant 0 : index
    %10 = vector.load %arg5[%c0_9, %c0_10] : memref<1x256xf32, #tpu.memory_space<vmem>>, vector<1x256xf32>
    %11 = vector.broadcast %10 : vector<1x256xf32> to vector<8x256xf32>
    %12 = arith.addf %9, %11 : vector<8x256xf32>
    %13 = vector.extract_strided_slice %12 {offsets = [0, 0], sizes = [8, 128], strides = [1, 1]} : vector<8x256xf32> to vector<8x128xf32>
    %14 = vector.extract_strided_slice %12 {offsets = [0, 128], sizes = [8, 128], strides = [1, 1]} : vector<8x256xf32> to vector<8x128xf32>
    %c0_11 = arith.constant 0 : index
    %c0_12 = arith.constant 0 : index
    %15 = vector.load %arg7[%c0_11, %c0_12] : memref<8x128xf32, #tpu.memory_space<vmem>>, vector<8x128xf32>
    tpu.vector_store %arg7[%c0_11, %c0_12], %13 {strides = array<i32>} : memref<8x128xf32, #tpu.memory_space<vmem>>, vector<8x128xf32>,
    %c0_13 = arith.constant 0 : index
    %c0_14 = arith.constant 0 : index
    %16 = vector.load %arg8[%c0_13, %c0_14] : memref<8x128xf32, #tpu.memory_space<vmem>>, vector<8x128xf32>
    tpu.vector_store %arg8[%c0_13, %c0_14], %14 {strides = array<i32>} : memref<8x128xf32, #tpu.memory_space<vmem>>, vector<8x128xf32>,
    %17 = math.exp %14 : vector<8x128xf32>
    %c0_15 = arith.constant 0 : index
    %c0_16 = arith.constant 0 : index
    %18 = vector.load %arg6[%c0_15, %c0_16] : memref<8x128xf32, #tpu.memory_space<vmem>>, vector<8x128xf32>
    %19 = arith.mulf %17, %18 : vector<8x128xf32>
    %20 = arith.addf %13, %19 : vector<8x128xf32>
    %c0_17 = arith.constant 0 : index
    %c0_18 = arith.constant 0 : index
    %21 = vector.load %arg9[%c0_17, %c0_18] : memref<8x128xf32, #tpu.memory_space<vmem>>, vector<8x128xf32>
    tpu.vector_store %arg9[%c0_17, %c0_18], %20 {strides = array<i32>} : memref<8x128xf32, #tpu.memory_space<vmem>>, vector<8x128xf32>,
    return
  }
  func.func @transform_0(%arg0: i32) -> (i32, i32) {
    %c0_i32 = arith.constant 0 : i32
    %c0_i32_0 = arith.constant 0 : i32
    return %arg0, %c0_i32 : i32, i32
  }
  func.func @transform_1(%arg0: i32) -> (i32, i32) {
    %c0_i32 = arith.constant 0 : i32
    %c0_i32_0 = arith.constant 0 : i32
    %c0_i32_1 = arith.constant 0 : i32
    return %c0_i32, %c0_i32_0 : i32, i32
  }
  func.func @transform_2(%arg0: i32) -> (i32, i32) {
    %c0_i32 = arith.constant 0 : i32
    %c0_i32_0 = arith.constant 0 : i32
    %c0_i32_1 = arith.constant 0 : i32
    return %c0_i32, %c0_i32_0 : i32, i32
  }
  func.func @transform_3(%arg0: i32) -> (i32, i32) {
    %c0_i32 = arith.constant 0 : i32
    %c0_i32_0 = arith.constant 0 : i32
    %c0_i32_1 = arith.constant 0 : i32
    return %c0_i32, %c0_i32_0 : i32, i32
  }
  func.func @transform_4(%arg0: i32) -> (i32, i32) {
    %c0_i32 = arith.constant 0 : i32
    %c0_i32_0 = arith.constant 0 : i32
    %c0_i32_1 = arith.constant 0 : i32
    return %c0_i32, %c0_i32_0 : i32, i32
  }
  func.func @transform_5(%arg0: i32) -> (i32, i32) {
    %c0_i32 = arith.constant 0 : i32
    %c0_i32_0 = arith.constant 0 : i32
    return %arg0, %c0_i32 : i32, i32
  }
  func.func @transform_6(%arg0: i32) -> (i32, i32) {
    %c0_i32 = arith.constant 0 : i32
    %c0_i32_0 = arith.constant 0 : i32
    return %arg0, %c0_i32 : i32, i32
  }
  func.func @transform_7(%arg0: i32) -> (i32, i32) {
    %c0_i32 = arith.constant 0 : i32
    %c0_i32_0 = arith.constant 0 : i32
    return %arg0, %c0_i32 : i32, i32
  }
  func.func @transform_8(%arg0: i32) -> (i32, i32) {
    %c0_i32 = arith.constant 0 : i32
    %c0_i32_0 = arith.constant 0 : i32
    return %arg0, %c0_i32 : i32, i32
  }
}

</mosaic_0001>

<bundles_post_ra>
// kernel: tpu_custom_call.1
= control target key start
LH: loop header
LB: loop body
LE: loop exit
PB: predicated region body
PF: predicated region fallthrough
CT: control target
= control target key end

     0   :  { %14 = vsyncpa [#allocation3], 0  ;;  %s662_s0 = inlined_call_operand.hbm [shape: f32[8,128], index: 0, kind: input, shape index: {}]   ;;  %s663_s1 = inlined_call_operand.hbm [shape: f32[128,128], index: 1, kind: input, shape index: {}]   ;;  %s664_s2 = inlined_call_operand.vmem [shape: f32[1,128], index: 2, kind: input, shape index: {}]   ;;  %s665_s3 = inlined_call_operand.hbm [shape: f32[128,256], index: 3, kind: input, shape index: {}]   ;;  %s666_s4 = inlined_call_operand.hbm [shape: f32[1,256], index: 4, kind: input, shape index: {}]   ;;  %s667_s5 = inlined_call_operand.vmem [shape: f32[8,128], index: 5, kind: input, shape index: {}]   ;;  %s668_s6 = inlined_call_operand.hbm [shape: f32[8,128], index: 6, kind: output, shape index: {0}]   ;;  %s669_s7 = inlined_call_operand.hbm [shape: f32[8,128], index: 7, kind: output, shape index: {1}]   ;;  %s670_s8 = inlined_call_operand.hbm [shape: f32[8,128], index: 8, kind: output, shape index: {2}]  }
   0x1   :  { %15 = vsyncpa [#allocation6], 0 }
   0x2   :  { %16 = vsyncpa [#allocation9], 0 }
   0x3   :  { %17 = vsyncpa [#allocation4], 0 }
   0x4   :  { %18 = vsyncpa [#allocation12], 0  ;;  %s559_s27 = smov [#allocation5]  }
   0x5   :  { %s34_s28 = sshll.u32 %s559_s27, 4  ;;  %s35_s28 = int_to_ptr.vmem [resolvable:$true] %s34_s28 }
   0x6   :  { %s417_s29 = scalar_lea.vmem %s35_s28, 2048  ;;  %p422_p1 = scmp.lt.s32.totalorder %s35_s28, %s35_s28 }
   0x7   :  { %p418_p0 = scmp.ne.s32.totalorder %s35_s28, %s417_s29  ;;  %p423_p2 = scmp.lt.s32.totalorder %s417_s29, %s417_s29 }
   0x9   :  { %p424_p3 = por %p423_p2, %p422_p1 }
   0xb   :  { %p425_p4 = pnand %p424_p3, %p418_p0 }
   0xd   :  { %428 = shalt.err (!%p425_p4)
}
   0xe   :  { %s560_s30 = smov 128   ;;  %s561_s9 = smov 8  }
   0xf   :  { %40 = dma.hbm_to_vmem [thread:$0]  %s663_s1, 2048, %s35_s28, [#allocation6], %s560_s30, %s560_s30, %s561_s9  }
  0x10   :  { %s562_s12 = smov [#allocation2]   ;;  %s563_s14 = smov [#allocation7]  }
  0x11   :  { %s25_s13 = sshll.u32 %s562_s12, 4  ;;  %s48_s15 = sshll.u32 %s563_s14, 4  ;;  %s26_s13 = int_to_ptr.vmem [resolvable:$true] %s25_s13  ;;  %s49_s15 = int_to_ptr.vmem [resolvable:$true] %s48_s15 }
  0x12   :  { %s437_s16 = scalar_lea.vmem %s26_s13, 128  ;;  %p442_p6 = scmp.lt.s32.totalorder %s26_s13, %s26_s13 }
  0x13   :  { %p438_p5 = scmp.ne.s32.totalorder %s26_s13, %s437_s16  ;;  %p443_p7 = scmp.lt.s32.totalorder %s437_s16, %s437_s16 }
  0x15   :  { %p444_p8 = por %p443_p7, %p442_p6 }
  0x17   :  { %p445_p9 = pnand %p444_p8, %p438_p5 }
  0x19   :  { %448 = shalt.err (!%p445_p9)
}
  0x1a   :  { %28 = dma.hbm_to_vmem [thread:$0]  %s662_s0, 128, %s26_s13, [#allocation3]  }
  0x1b   :  { %s457_s19 = scalar_lea.vmem %s49_s15, 4096  ;;  %p462_p11 = scmp.lt.s32.totalorder %s49_s15, %s49_s15 }
  0x1c   :  { %p458_p10 = scmp.ne.s32.totalorder %s49_s15, %s457_s19  ;;  %p463_p12 = scmp.lt.s32.totalorder %s457_s19, %s457_s19 }
  0x1e   :  { %p464_p13 = por %p463_p12, %p462_p11 }
  0x20   :  { %p465_p0 = pnand %p464_p13, %p458_p10 }
  0x22   :  { %468 = shalt.err (!%p465_p0)
}
  0x23   :  { %s564_s1 = smov 256   ;;  %s565_s20 = smov 16  }
  0x24   :  { %54 = dma.hbm_to_vmem [thread:$0]  %s665_s3, 4096, %s49_s15, [#allocation6], %s564_s1, %s564_s1, %s565_s20  }
  0x25   :  { %s566_s23 = smov [#allocation8]  }
  0x26   :  { %s61_s24 = sshll.u32 %s566_s23, 4  ;;  %s62_s24 = int_to_ptr.vmem [resolvable:$true] %s61_s24 }
  0x27   :  { %s477_s25 = scalar_lea.vmem %s62_s24, 32  ;;  %p482_p2 = scmp.lt.s32.totalorder %s62_s24, %s62_s24 }
  0x28   :  { %p478_p1 = scmp.ne.s32.totalorder %s62_s24, %s477_s25  ;;  %p483_p3 = scmp.lt.s32.totalorder %s477_s25, %s477_s25 }
  0x2a   :  { %p484_p4 = por %p483_p3, %p482_p2 }
  0x2c   :  { %p485_p5 = pnand %p484_p4, %p478_p1 }
  0x2e   :  { %488 = shalt.err (!%p485_p5)
}
  0x2f   :  { %64 = dma.hbm_to_vmem [thread:$0]  %s666_s4, 32, %s62_s24, [#allocation9]  }
  0x30   :  { %549 = dma.done.wait [#allocation3], 128  }
  0x31   :  { %550 = vsyncadd [#allocation3], 4294967168 }
  0x32   :  { %551 = dma.done.wait [#allocation6], 6144  }
  0x33   :  { %552 = vsyncadd [#allocation6], 4294961152 }
  0x34   :  { %553 = dma.done.wait [#allocation9], 32  }
  0x35   :  { %554 = vsyncadd [#allocation9], 4294967264  ;;  %v567_v0 = vmov 0.0   ;;  %vm568_vm0 = vmmov 0   ;;  %v95_v1 = vld [vmem:[#allocation5 + $0x78] sm:$0xff]  ;;  %v94_v2 = vld [vmem:[#allocation5 + $0x70] sm:$0xff]  ;;  %v208_v55 = vlaneseq }
  0x36   :  { %359 = vmatprep.subr.mxu0 %v567_v0  ;;  %391 = vmatprep.mubr.msk.f32.mxu0 %vm568_vm0, %v567_v0  ;;  %v93_v3 = vld [vmem:[#allocation5 + $0x68] sm:$0xff]  ;;  %v92_v4 = vld [vmem:[#allocation5 + $0x60] sm:$0xff]  ;;  %v91_v5 = vld [vmem:[#allocation5 + $0x58] sm:$0xff]  ;;  %s569_s27 = smov [#allocation10]   ;;  %s570_s29 = smov [#allocation11]  }
  0x37   :  { %282 = vmatprep.mubr.f32.mxu1 %v567_v0  ;;  %360 = vmatpush3.msra.mxu0 %v95_v1  ;;  %v205_v6 = vld [vmem:[#allocation7 + $0xf8] sm:$0xff]  ;;  %v204_v7 = vld [vmem:[#allocation7 + $0xf0] sm:$0xff]  ;;  %v203_v8 = vld [vmem:[#allocation7 + $0xe8] sm:$0xff]  ;;  %v209_v56 = vshrl.u32 %v208_v55, 7  ;;  %s303_s28 = sshll.u32 %s569_s27, 4  ;;  %s313_s30 = sshll.u32 %s570_s29, 4  ;;  %s304_s28 = int_to_ptr.vmem [resolvable:$true] %s303_s28  ;;  %s314_s30 = int_to_ptr.vmem [resolvable:$true] %s313_s30 }
  0x38   :  { %361 = vmatprep.subr.mxu0 %v567_v0  ;;  %218 = vmatprep.subr.mxu1 %v205_v6  ;;  %v202_v9 = vld [vmem:[#allocation7 + $0xe0] sm:$0xff]  ;;  %v201_v10 = vld [vmem:[#allocation7 + $0xd8] sm:$0xff]  ;;  %v90_v11 = vld [vmem:[#allocation5 + $0x50] sm:$0xff]  ;;  %p494_p7 = scmp.lt.s32.totalorder %s304_s28, %s304_s28 }
  0x39   :  { %362 = vmatpush3.msra.mxu0 %v94_v2  ;;  %219 = vmatpush1.msra.mxu1 %v204_v7  ;;  %v200_v12 = vld [vmem:[#allocation7 + $0xd0] sm:$0xff]  ;;  %v199_v13 = vld [vmem:[#allocation7 + $0xc8] sm:$0xff]  ;;  %v198_v15 = vld [vmem:[#allocation7 + $0xc0] sm:$0xff]  ;;  %v210_v57 = vsub.s32 0, %v209_v56  ;;  %v214_v59 = vsub.s32 1, %v209_v56 }
  0x3a   :  { %363 = vmatprep.subr.mxu0 %v567_v0  ;;  %220 = vmatprep.subr.mxu1 %v203_v8  ;;  %v89_v14 = vld [vmem:[#allocation5 + $0x48] sm:$0xff]  ;;  %v197_v16 = vld [vmem:[#allocation7 + $0xb8] sm:$0xff]  ;;  %v88_v17 = vld [vmem:[#allocation5 + $0x40] sm:$0xff] }
  0x3b   :  { %364 = vmatpush3.msra.mxu0 %v93_v3  ;;  %221 = vmatpush1.msra.mxu1 %v202_v9  ;;  %v196_v18 = vld [vmem:[#allocation7 + $0xb0] sm:$0xff]  ;;  %v195_v19 = vld [vmem:[#allocation7 + $0xa8] sm:$0xff]  ;;  %v87_v20 = vld [vmem:[#allocation5 + $0x38] sm:$0xff] }
  0x3c   :  { %365 = vmatprep.subr.mxu0 %v567_v0  ;;  %222 = vmatprep.subr.mxu1 %v201_v10  ;;  %v194_v21 = vld [vmem:[#allocation7 + $0xa0] sm:$0xff]  ;;  %v193_v22 = vld [vmem:[#allocation7 + $0x98] sm:$0xff]  ;;  %v86_v23 = vld [vmem:[#allocation5 + $0x30] sm:$0xff] }
  0x3d   :  { %366 = vmatpush3.msra.mxu0 %v92_v4  ;;  %223 = vmatpush1.msra.mxu1 %v200_v12  ;;  %v192_v24 = vld [vmem:[#allocation7 + $0x90] sm:$0xff]  ;;  %v191_v25 = vld [vmem:[#allocation7 + $0x88] sm:$0xff]  ;;  %v190_v27 = vld [vmem:[#allocation7 + $0x80] sm:$0xff] }
  0x3e   :  { %367 = vmatprep.subr.mxu0 %v567_v0  ;;  %224 = vmatprep.subr.mxu1 %v199_v13  ;;  %v85_v26 = vld [vmem:[#allocation5 + $0x28] sm:$0xff]  ;;  %v189_v28 = vld [vmem:[#allocation7 + $0x78] sm:$0xff]  ;;  %v84_v29 = vld [vmem:[#allocation5 + $0x20] sm:$0xff] }
  0x3f   :  { %368 = vmatpush3.msra.mxu0 %v91_v5  ;;  %225 = vmatpush1.msra.mxu1 %v198_v15  ;;  %v188_v30 = vld [vmem:[#allocation7 + $0x70] sm:$0xff]  ;;  %v187_v31 = vld [vmem:[#allocation7 + $0x68] sm:$0xff]  ;;  %v83_v32 = vld [vmem:[#allocation5 + $0x18] sm:$0xff] }
  0x40   :  { %369 = vmatprep.subr.mxu0 %v567_v0  ;;  %226 = vmatprep.subr.mxu1 %v197_v16  ;;  %v186_v33 = vld [vmem:[#allocation7 + $0x60] sm:$0xff]  ;;  %v185_v34 = vld [vmem:[#allocation7 + $0x58] sm:$0xff]  ;;  %v82_v35 = vld [vmem:[#allocation5 + $0x10] sm:$0xff] }
  0x41   :  { %370 = vmatpush3.msra.mxu0 %v90_v11  ;;  %227 = vmatpush1.msra.mxu1 %v196_v18  ;;  %v184_v36 = vld [vmem:[#allocation7 + $0x50] sm:$0xff]  ;;  %v183_v37 = vld [vmem:[#allocation7 + $0x48] sm:$0xff]  ;;  %v182_v39 = vld [vmem:[#allocation7 + $0x40] sm:$0xff] }
  0x42   :  { %371 = vmatprep.subr.mxu0 %v567_v0  ;;  %228 = vmatprep.subr.mxu1 %v195_v19  ;;  %v81_v38 = vld [vmem:[#allocation5 + $0x8] sm:$0xff]  ;;  %v181_v40 = vld [vmem:[#allocation7 + $0x38] sm:$0xff]  ;;  %v80_v41 = vld [vmem:[#allocation5] sm:$0xff] }
  0x43   :  { %372 = vmatpush3.msra.mxu0 %v89_v14  ;;  %229 = vmatpush1.msra.mxu1 %v194_v21  ;;  %v180_v42 = vld [vmem:[#allocation7 + $0x30] sm:$0xff]  ;;  %v79_v43 = vld [vmem:[#allocation2] sm:$0xff]  ;;  %v179_v44 = vld [vmem:[#allocation7 + $0x28] sm:$0xff] }
  0x44   :  { %373 = vmatprep.subr.mxu0 %v567_v0  ;;  %230 = vmatprep.subr.mxu1 %v193_v22  ;;  %v178_v45 = vld [vmem:[#allocation7 + $0x20] sm:$0xff]  ;;  %v177_v46 = vld [vmem:[#allocation7 + $0x18] sm:$0xff]  ;;  %v176_v47 = vld [vmem:[#allocation7 + $0x10] sm:$0xff] }
  0x45   :  { %374 = vmatpush3.msra.mxu0 %v88_v17  ;;  %231 = vmatpush1.msra.mxu1 %v192_v24  ;;  %v175_v48 = vld [vmem:[#allocation7 + $0x8] sm:$0xff]  ;;  %v174_v49 = vld [vmem:[#allocation7] sm:$0xff]  ;;  %v341_v50 = vld [vmem:[%s664_s2] ss:$0 sm:$0xff]  ;;  %s489_s2 = scalar_lea.vmem %s304_s28, 128 }
  0x46   :  { %375 = vmatprep.subr.mxu0 %v567_v0  ;;  %232 = vmatprep.subr.mxu1 %v191_v25  ;;  %v206_v58 = vld [vmem:[#allocation8] sm:$0x3]  ;;  %p490_p6 = scmp.ne.s32.totalorder %s304_s28, %s489_s2  ;;  %p495_p8 = scmp.lt.s32.totalorder %s489_s2, %s489_s2 }
  0x47   :  { %376 = vmatpush3.msra.mxu0 %v87_v20  ;;  %233 = vmatpush1.msra.mxu1 %v190_v27  ;;  %v211_v60 = vrot.slane %v206_v58, %v210_v57  ;;  %v215_v61 = vrot.slane %v206_v58, %v214_v59 }
  0x48   :  { %377 = vmatprep.subr.mxu0 %v567_v0  ;;  %234 = vmatprep.subr.mxu1 %v189_v28  ;;  %p496_p9 = por %p495_p8, %p494_p7 }
  0x49   :  { %378 = vmatpush3.msra.mxu0 %v86_v23  ;;  %235 = vmatpush1.msra.mxu1 %v188_v30 }
  0x4a   :  { %379 = vmatprep.subr.mxu0 %v567_v0  ;;  %236 = vmatprep.subr.mxu1 %v187_v31  ;;  %p497_p10 = pnand %p496_p9, %p490_p6 }
  0x4b   :  { %380 = vmatpush3.msra.mxu0 %v85_v26  ;;  %237 = vmatpush1.msra.mxu1 %v186_v33 }
  0x4c   :  { %381 = vmatprep.subr.mxu0 %v567_v0  ;;  %238 = vmatprep.subr.mxu1 %v185_v34 }
  0x4d   :  { %382 = vmatpush3.msra.mxu0 %v84_v29  ;;  %239 = vmatpush1.msra.mxu1 %v184_v36 }
  0x4e   :  { %383 = vmatprep.subr.mxu0 %v567_v0  ;;  %240 = vmatprep.subr.mxu1 %v183_v37 }
  0x4f   :  { %384 = vmatpush3.msra.mxu0 %v83_v32  ;;  %241 = vmatpush1.msra.mxu1 %v182_v39 }
  0x50   :  { %385 = vmatprep.subr.mxu0 %v567_v0  ;;  %242 = vmatprep.subr.mxu1 %v181_v40 }
  0x51   :  { %386 = vmatpush3.msra.mxu0 %v82_v35  ;;  %243 = vmatpush1.msra.mxu1 %v180_v42 }
  0x52   :  { %387 = vmatprep.subr.mxu0 %v567_v0  ;;  %244 = vmatprep.subr.mxu1 %v179_v44 }
  0x53   :  { %388 = vmatpush3.msra.mxu0 %v81_v38  ;;  %245 = vmatpush1.msra.mxu1 %v178_v45 }
  0x54   :  { %389 = vmatprep.subr.mxu0 %v567_v0  ;;  %246 = vmatprep.subr.mxu1 %v177_v46 }
  0x55   :  { %390 = vmatpush3.msra.mxu0 %v80_v41  ;;  %247 = vmatpush1.msra.mxu1 %v176_v47 }
  0x56   :  { %392 = vmatmul.mubr.f32.vlgmr.msra.gmra.mxu0 %v79_v43  ;;  %248 = vmatprep.subr.mxu1 %v175_v48 }
  0x57   :  { %249 = vmatpush1.msra.mxu1 %v174_v49 }
 0x116   :  { %v169_v51 = vpop.f32.mrf.mxu0 }
 0x117   :  { %v170_v52 = vadd.f32 %v341_v50, %v169_v51 }
 0x118   :  { %v393_v53 = vpop.f32.mrf.mxu0 }
 0x119   :  { %v173_v54 = vmax.f32 %v170_v52, 0.0 }
 0x11b   :  { %283 = vmatmul.mubr.f32.vlgmr.msra.gmra.mxu1 %v173_v54 }
 0x1db   :  { %v284_v62 = vpop.f32.mrf.mxu1 }
 0x1dc   :  { %v285_v63 = vadd.f32 %v284_v62, %v211_v60 }
 0x1dd   :  { %v286_v0 = vpop.f32.mrf.mxu1 }
 0x1de   :  { %289 = vst [vmem:[#allocation10] sm:$0xff] %v285_v63  ;;  %v287_v1 = vadd.f32 %v286_v0, %v215_v61 }
 0x1df   :  { %500 = shalt.err (!%p497_p10)
}
 0x1e0   :  { %306 = dma.vmem_to_hbm [thread:$0]  %s304_s28, 128, %s668_s6, [#allocation4]   ;;  %v291_v2 = vmul.f32 1.442695, %v287_v1  ;;  %290 = vst [vmem:[#allocation11] sm:$0xff] %v287_v1 }
 0x1e1   :  { %s509_s11 = scalar_lea.vmem %s314_s30, 128  ;;  %p514_p12 = scmp.lt.s32.totalorder %s314_s30, %s314_s30 }
 0x1e2   :  { %p510_p11 = scmp.ne.s32.totalorder %s314_s30, %s509_s11  ;;  %p515_p13 = scmp.lt.s32.totalorder %s509_s11, %s509_s11 }
 0x1e4   :  { %p516_p0 = por %p515_p13, %p514_p12 }
 0x1e6   :  { %p517_p1 = pnand %p516_p0, %p510_p11 }
 0x1e8   :  { %520 = shalt.err (!%p517_p1)
}
 0x1e9   :  { %316 = dma.vmem_to_hbm [thread:$0]  %s314_s30, 128, %s669_s7, [#allocation12]   ;;  %407 = vpow2.f32 %v291_v2  ;;  %v293_v3 = vld [vmem:[%s667_s5] sm:$0xff] }
 0x1ea   :  { %s571_s6 = smov [#allocation13]  }
 0x1eb   :  { %s323_s16 = sshll.u32 %s571_s6, 4  ;;  %s324_s16 = int_to_ptr.vmem [resolvable:$true] %s323_s16 }
 0x1ec   :  { %s529_s17 = scalar_lea.vmem %s324_s16, 128  ;;  %p534_p3 = scmp.lt.s32.totalorder %s324_s16, %s324_s16 }
 0x1ed   :  { %p530_p2 = scmp.ne.s32.totalorder %s324_s16, %s529_s17  ;;  %p535_p4 = scmp.lt.s32.totalorder %s529_s17, %s529_s17 }
 0x1ef   :  { %p536_p5 = por %p535_p4, %p534_p3 }
 0x1f1   :  { %p537_p6 = pnand %p536_p5, %p530_p2 }
 0x1f6   :  { %v408_v4 = vpop.eup %407 }
 0x1f7   :  { %v294_v5 = vmul.f32 %v408_v4, %v293_v3 }
 0x1f9   :  { %v295_v6 = vadd.f32 %v294_v5, %v285_v63 }
 0x1fb   :  { %296 = vst [vmem:[#allocation13] sm:$0xff] %v295_v6 }
 0x1fc   :  { %540 = shalt.err (!%p537_p6)
}
 0x1fd   :  { %326 = dma.vmem_to_hbm [thread:$0]  %s324_s16, 128, %s670_s8, [#allocation12]  }
 0x1fe   :  { %555 = dma.done.wait [#allocation4], 128  }
 0x1ff   :  { %556 = vsyncadd [#allocation4], 4294967168 }
 0x200   :  { %557 = dma.done.wait [#allocation12], 256  }
 0x201   :  { %558 = vsyncadd [#allocation12], 4294967040 }
 0x202   :  { %336 = vsyncpa [#allocation3], 1 }
 0x203   :  { %337 = vsyncpa [#allocation6], 1 }
 0x204   :  { %338 = vsyncpa [#allocation9], 1 }
 0x205   :  { %339 = vsyncpa [#allocation4], 1 }
 0x206   :  { %340 = vsyncpa [#allocation12], 1 }

</bundles_post_ra>
